<compile_context>
chip_gen: v6e
topology: v6e:2x2x1
jax: 0.10.0
libtpu: 0.0.40
codegen_flags: <defaults>
</compile_context>

<pallas_src>
import functools

import jax
import jax.numpy as jnp
from jax.experimental import pallas as pl
from jax.experimental.pallas import tpu as pltpu


def _pos_enc_kernel(x_ref, o_ref, *, num_frequencies, coord_dim):
    """Lane-dense positional encoding.

    x_ref: (D, block_n)              D coordinates on sublanes, N on lanes.
    o_ref: (D*(1+2F), block_n)       row blocks: [x, sin f0, cos f0, sin f1, ...]
    """
    d = coord_dim
    x = x_ref[...].astype(jnp.float32)

    # Identity term (== torch.cat([lon_lat], dim=-1)).
    o_ref[0:d, :] = x.astype(o_ref.dtype)

    # freq_bands = 2**[0..F-1] are exact powers of two, so use the
    # double-angle recurrence: 2 EUP transcendentals total instead of 2F.
    s = jnp.sin(x)   # sin(x * 2^0)
    c = jnp.cos(x)   # cos(x * 2^0)
    for j in range(num_frequencies):
        row = d * (1 + 2 * j)
        o_ref[row:row + d, :] = s.astype(o_ref.dtype)
        o_ref[row + d:row + 2 * d, :] = c.astype(o_ref.dtype)
        if j + 1 < num_frequencies:
            # sin(2a) = 2 sin a cos a ; cos(2a) = 2 cos^2 a - 1  (VPU only)
            s, c = 2.0 * s * c, 2.0 * c * c - 1.0


def position_encoder(lon_lat, num_frequencies, *, block_lanes=8192, out_dtype=None):
    """JAX/Pallas equivalent of PositionEncoder.forward.

    lon_lat: (..., D) float array.
    returns: (..., D * (1 + 2 * num_frequencies)) array.

    block_lanes: number of flattened rows processed per grid step (lane axis);
                 must be a multiple of 128.
    out_dtype:   optional narrower output dtype (e.g. jnp.bfloat16 on v6e/v7x
                 where the kernel is HBM-write bound); default = input dtype.
    """
    lon_lat = jnp.asarray(lon_lat)
    orig_shape = lon_lat.shape
    d = orig_shape[-1]
    out_d = d * (1 + 2 * num_frequencies)
    out_dtype = lon_lat.dtype if out_dtype is None else out_dtype

    # Flatten leading dims into rows, then transpose so N is the lane axis.
    x2d = lon_lat.reshape(-1, d)
    n = x2d.shape[0]
    xt = x2d.T                                        # (D, N)

    # Pick the lane-block: multiple of 128, no larger than needed.
    lanes_needed = max(128, ((n + 127) // 128) * 128)
    block_n = min(block_lanes, lanes_needed)
    n_pad = ((n + block_n - 1) // block_n) * block_n
    if n_pad != n:
        xt = jnp.pad(xt, ((0, 0), (0, n_pad - n)))

    kernel = functools.partial(
        _pos_enc_kernel, num_frequencies=num_frequencies, coord_dim=d
    )

    out_t = pl.pallas_call(
        kernel,
        out_shape=jax.ShapeDtypeStruct((out_d, n_pad), out_dtype),
        grid_spec=pltpu.PrefetchScalarGridSpec(
            num_scalar_prefetch=0,
            grid=(n_pad // block_n,),
            in_specs=[pl.BlockSpec((d, block_n), lambda i: (0, i))],
            out_specs=pl.BlockSpec((out_d, block_n), lambda i: (0, i)),
        ),
        compiler_params=pltpu.CompilerParams(
            # Row-blocks are independent -> shard across TensorCores (v7x megacore).
            dimension_semantics=("parallel",),
            # Default block sizes stay far below the scoped-VMEM default on
            # v5e/v6e/v7x; raise vmem_limit_bytes here only if block_lanes is
            # pushed much larger.
        ),
    )(xt)

    # Back to row-major (N, out_d) and original leading shape.
    out2d = out_t[:, :n].T
    return out2d.reshape(*orig_shape[:-1], out_d)


def _reference(lon_lat, num_frequencies):
    """Pure-JAX reference matching the PyTorch forward exactly."""
    freq_bands = 2.0 ** jnp.linspace(0.0, num_frequencies - 1, num_frequencies)
    inputs = lon_lat
    encodings = [inputs]
    for f in freq_bands:
        encodings.append(jnp.sin(inputs * f))
        encodings.append(jnp.cos(inputs * f))
    return jnp.concatenate(encodings, axis=-1)


if __name__ == "__main__":
    key = jax.random.PRNGKey(0)
    num_frequencies = 4
    batch, seq, coord = 2, 8, 2                       # lon/lat pairs
    lon_lat = jax.random.uniform(
        key, (batch, seq, coord), dtype=jnp.float32, minval=-3.14, maxval=3.14
    )

    out = position_encoder(lon_lat, num_frequencies)
    out = jax.block_until_ready(out)

    ref = _reference(lon_lat, num_frequencies)
    assert out.shape == (batch, seq, coord * (1 + 2 * num_frequencies)), out.shape
    # Tolerance slightly looser than the pure-sin/cos version to accommodate the
    # (few-ULP-per-doubling) drift of the double-angle recurrence.
    assert jnp.allclose(out, ref, atol=1e-4, rtol=1e-4), "mismatch vs reference"

    # Second check: multi-block grid + row padding path (block_lanes=128).
    key2 = jax.random.PRNGKey(1)
    lon_lat2 = jax.random.uniform(
        key2, (3, 100, 2), dtype=jnp.float32, minval=-10.0, maxval=10.0
    )
    out2 = jax.block_until_ready(
        position_encoder(lon_lat2, num_frequencies, block_lanes=128)
    )
    ref2 = _reference(lon_lat2, num_frequencies)
    assert out2.shape == ref2.shape, out2.shape
    assert jnp.allclose(out2, ref2, atol=1e-4, rtol=1e-4), "mismatch vs reference (multi-block)"

    print("KERNEL_OK")
</pallas_src>

<mosaic_0001>
module attributes {stable_mosaic.version = 11 : i64} {
  func.func @_pos_enc_kernel(%arg0: i32, %arg1: memref<2x128xf32, #tpu.memory_space<vmem>>, %arg2: memref<18x128xf32, #tpu.memory_space<vmem>>) attributes {dimension_semantics = [#tpu.dimension_semantics<parallel>], iteration_bounds = array<i64: 1>, scalar_prefetch = 0 : i64, scratch_operands = 0 : i64, tpu.core_type = #tpu.core_type<tc>, window_params = [{transform_indices = @transform_0, window_bounds = array<i64: 2, 128>}, {transform_indices = @transform_1, window_bounds = array<i64: 18, 128>}]} {
    %c0 = arith.constant 0 : index
    %c0_0 = arith.constant 0 : index
    %0 = vector.load %arg1[%c0, %c0_0] : memref<2x128xf32, #tpu.memory_space<vmem>>, vector<2x128xf32>
    %c0_1 = arith.constant 0 : index
    %c0_2 = arith.constant 0 : index
    %1 = vector.load %arg2[%c0_1, %c0_2] : memref<18x128xf32, #tpu.memory_space<vmem>>, vector<2x128xf32>
    tpu.vector_store %arg2[%c0_1, %c0_2], %0 {strides = array<i32>} : memref<18x128xf32, #tpu.memory_space<vmem>>, vector<2x128xf32>,
    %2 = math.sin %0 : vector<2x128xf32>
    %3 = math.cos %0 : vector<2x128xf32>
    %c2 = arith.constant 2 : index
    %c0_3 = arith.constant 0 : index
    %4 = vector.load %arg2[%c2, %c0_3] : memref<18x128xf32, #tpu.memory_space<vmem>>, vector<2x128xf32>
    tpu.vector_store %arg2[%c2, %c0_3], %2 {strides = array<i32>} : memref<18x128xf32, #tpu.memory_space<vmem>>, vector<2x128xf32>,
    %c4 = arith.constant 4 : index
    %c0_4 = arith.constant 0 : index
    %5 = vector.load %arg2[%c4, %c0_4] : memref<18x128xf32, #tpu.memory_space<vmem>>, vector<2x128xf32>
    tpu.vector_store %arg2[%c4, %c0_4], %3 {strides = array<i32>} : memref<18x128xf32, #tpu.memory_space<vmem>>, vector<2x128xf32>,
    %cst = arith.constant 2.000000e+00 : f32
    %6 = vector.broadcast %cst : f32 to vector<2x128xf32>
    %7 = arith.mulf %6, %2 : vector<2x128xf32>
    %8 = arith.mulf %7, %3 : vector<2x128xf32>
    %cst_5 = arith.constant 2.000000e+00 : f32
    %9 = vector.broadcast %cst_5 : f32 to vector<2x128xf32>
    %10 = arith.mulf %9, %3 : vector<2x128xf32>
    %11 = arith.mulf %10, %3 : vector<2x128xf32>
    %cst_6 = arith.constant 1.000000e+00 : f32
    %12 = vector.broadcast %cst_6 : f32 to vector<2x128xf32>
    %13 = arith.subf %11, %12 : vector<2x128xf32>
    %c6 = arith.constant 6 : index
    %c0_7 = arith.constant 0 : index
    %14 = vector.load %arg2[%c6, %c0_7] : memref<18x128xf32, #tpu.memory_space<vmem>>, vector<2x128xf32>
    tpu.vector_store %arg2[%c6, %c0_7], %8 {strides = array<i32>} : memref<18x128xf32, #tpu.memory_space<vmem>>, vector<2x128xf32>,
    %c8 = arith.constant 8 : index
    %c0_8 = arith.constant 0 : index
    %15 = vector.load %arg2[%c8, %c0_8] : memref<18x128xf32, #tpu.memory_space<vmem>>, vector<2x128xf32>
    tpu.vector_store %arg2[%c8, %c0_8], %13 {strides = array<i32>} : memref<18x128xf32, #tpu.memory_space<vmem>>, vector<2x128xf32>,
    %cst_9 = arith.constant 2.000000e+00 : f32
    %16 = vector.broadcast %cst_9 : f32 to vector<2x128xf32>
    %17 = arith.mulf %16, %8 : vector<2x128xf32>
    %18 = arith.mulf %17, %13 : vector<2x128xf32>
    %cst_10 = arith.constant 2.000000e+00 : f32
    %19 = vector.broadcast %cst_10 : f32 to vector<2x128xf32>
    %20 = arith.mulf %19, %13 : vector<2x128xf32>
    %21 = arith.mulf %20, %13 : vector<2x128xf32>
    %cst_11 = arith.constant 1.000000e+00 : f32
    %22 = vector.broadcast %cst_11 : f32 to vector<2x128xf32>
    %23 = arith.subf %21, %22 : vector<2x128xf32>
    %c10 = arith.constant 10 : index
    %c0_12 = arith.constant 0 : index
    %24 = vector.load %arg2[%c10, %c0_12] : memref<18x128xf32, #tpu.memory_space<vmem>>, vector<2x128xf32>
    tpu.vector_store %arg2[%c10, %c0_12], %18 {strides = array<i32>} : memref<18x128xf32, #tpu.memory_space<vmem>>, vector<2x128xf32>,
    %c12 = arith.constant 12 : index
    %c0_13 = arith.constant 0 : index
    %25 = vector.load %arg2[%c12, %c0_13] : memref<18x128xf32, #tpu.memory_space<vmem>>, vector<2x128xf32>
    tpu.vector_store %arg2[%c12, %c0_13], %23 {strides = array<i32>} : memref<18x128xf32, #tpu.memory_space<vmem>>, vector<2x128xf32>,
    %cst_14 = arith.constant 2.000000e+00 : f32
    %26 = vector.broadcast %cst_14 : f32 to vector<2x128xf32>
    %27 = arith.mulf %26, %18 : vector<2x128xf32>
    %28 = arith.mulf %27, %23 : vector<2x128xf32>
    %cst_15 = arith.constant 2.000000e+00 : f32
    %29 = vector.broadcast %cst_15 : f32 to vector<2x128xf32>
    %30 = arith.mulf %29, %23 : vector<2x128xf32>
    %31 = arith.mulf %30, %23 : vector<2x128xf32>
    %cst_16 = arith.constant 1.000000e+00 : f32
    %32 = vector.broadcast %cst_16 : f32 to vector<2x128xf32>
    %33 = arith.subf %31, %32 : vector<2x128xf32>
    %c14 = arith.constant 14 : index
    %c0_17 = arith.constant 0 : index
    %34 = vector.load %arg2[%c14, %c0_17] : memref<18x128xf32, #tpu.memory_space<vmem>>, vector<2x128xf32>
    tpu.vector_store %arg2[%c14, %c0_17], %28 {strides = array<i32>} : memref<18x128xf32, #tpu.memory_space<vmem>>, vector<2x128xf32>,
    %c16 = arith.constant 16 : index
    %c0_18 = arith.constant 0 : index
    %35 = vector.load %arg2[%c16, %c0_18] : memref<18x128xf32, #tpu.memory_space<vmem>>, vector<2x128xf32>
    tpu.vector_store %arg2[%c16, %c0_18], %33 {strides = array<i32>} : memref<18x128xf32, #tpu.memory_space<vmem>>, vector<2x128xf32>,
    return
  }
  func.func @transform_0(%arg0: i32) -> (i32, i32) {
    %c0_i32 = arith.constant 0 : i32
    %c0_i32_0 = arith.constant 0 : i32
    return %c0_i32, %arg0 : i32, i32
  }
  func.func @transform_1(%arg0: i32) -> (i32, i32) {
    %c0_i32 = arith.constant 0 : i32
    %c0_i32_0 = arith.constant 0 : i32
    return %c0_i32, %arg0 : i32, i32
  }
}

</mosaic_0001>

<bundles_post_ra>
// kernel: tpu_custom_call.1
= control target key start
LH: loop header
LB: loop body
LE: loop exit
PB: predicated region body
PF: predicated region fallthrough
CT: control target
= control target key end

     0   :  { %6 = vsyncpa [#allocation3], 0  ;;  %s391_s0 = inlined_call_operand.hbm [shape: f32[2,128], index: 0, kind: input, shape index: {}]   ;;  %s392_s1 = inlined_call_operand.hbm [shape: f32[18,128], index: 1, kind: output, shape index: {}]  }
   0x1   :  { %7 = vsyncpa [#allocation4], 0  ;;  %s343_s6 = smov [#allocation2]  }
   0x2   :  { %s14_s7 = sshll.u32 %s343_s6, 4  ;;  %s15_s7 = int_to_ptr.vmem [resolvable:$true] %s14_s7 }
   0x3   :  { %s307_s8 = scalar_lea.vmem %s15_s7, 32  ;;  %p312_p1 = scmp.lt.s32.totalorder %s15_s7, %s15_s7 }
   0x4   :  { %p308_p0 = scmp.ne.s32.totalorder %s15_s7, %s307_s8  ;;  %p313_p2 = scmp.lt.s32.totalorder %s307_s8, %s307_s8 }
   0x6   :  { %p314_p3 = por %p313_p2, %p312_p1 }
   0x8   :  { %p315_p4 = pnand %p314_p3, %p308_p0 }
   0xa   :  { %318 = shalt.err (!%p315_p4)
}
   0xb   :  { %17 = dma.hbm_to_vmem [thread:$0]  %s391_s0, 32, %s15_s7, [#allocation3]  }
   0xc   :  { %339 = dma.done.wait [#allocation3], 32  }
   0xd   :  { %340 = vsyncadd [#allocation3], 4294967264  ;;  %v366_v0 = vld [vmem:[#allocation2] sm:$0x3]  ;;  %v344_v12 = vmov 683565275  }
   0xe   :  { %22 = vst [vmem:[#allocation5] sm:$0x3] %v366_v0  ;;  %v26_v1 = vand.u32 2139095040, %v366_v0  ;;  %v23_v3 = vand.u32 2147483647, %v366_v0  ;;  %vm25_vm7 = vcmp.lt.s32.totalorder %v366_v0, 0  ;;  %vm115_vm15 = vweird.f32 %v366_v0 }
   0xf   :  { %v345_v14 = vmov 2475754826   ;;  %v346_v16 = vmov 2131351028   ;;  %v347_v18 = vmov 2102212464  }
  0x10   :  { %v27_v2 = vshrl.u32 %v26_v1, 23  ;;  %v30_v6 = vand.u32 8388607, %v23_v3  ;;  %v348_v20 = vmov 920167782   ;;  %s350_s0 = smov [#allocation5]  }
  0x11   :  { %v349_v27 = vmov 1326507024   ;;  %vm24_vm8 = vcmp.le.f32.partialorder %v23_v3, 0.7853982  ;;  %s258_s11 = sshll.u32 %s350_s0, 4  ;;  %s259_s11 = int_to_ptr.vmem [resolvable:$true] %s258_s11 }
  0x12   :  { %v270_v4 = vadd.s32 4294967169, %v27_v2  ;;  %v31_v10 = vor.u32 8388608, %v30_v6  ;;  %s319_s12 = scalar_lea.vmem %s259_s11, 384  ;;  %p324_p6 = scmp.lt.s32.totalorder %s259_s11, %s259_s11 }
  0x13   :  { %p320_p5 = scmp.ne.s32.totalorder %s259_s11, %s319_s12  ;;  %p325_p7 = scmp.lt.s32.totalorder %s319_s12, %s319_s12 }
  0x14   :  { %v33_v5 = vadd.s32 1, %v270_v4  ;;  %v71_v29 = vshll.u32 %v31_v10, 8 }
  0x15   :  { %p326_p8 = por %p325_p7, %p324_p6 }
  0x16   :  { %vm34_vm0 = vcmp.gt.s32.totalorder %v33_v5, 0 }
  0x17   :  { %v35_v7 = vsel %vm34_vm0, %v33_v5, 0  ;;  %p327_p9 = pnand %p326_p8, %p320_p5 }
  0x18   :  { %v37_v8 = vand.u32 31, %v35_v7  ;;  %v36_v9 = vshrl.u32 %v35_v7, 5 }
  0x1a   :  { %v38_v11 = vsub.s32 32, %v37_v8  ;;  %v40_v13 = vshll.u32 %v344_v12, %v37_v8  ;;  %v43_v15 = vshll.u32 %v345_v14, %v37_v8  ;;  %v46_v17 = vshll.u32 %v346_v16, %v37_v8 }
  0x1b   :  { %v49_v19 = vshll.u32 %v347_v18, %v37_v8  ;;  %v52_v21 = vshll.u32 %v348_v20, %v37_v8  ;;  %vm55_vm1 = vcmp.lt.s32.totalorder %v36_v9, 1  ;;  %vm58_vm2 = vcmp.lt.s32.totalorder %v36_v9, 4 }
  0x1c   :  { %v39_v22 = vshrl.u32 %v344_v12, %v38_v11  ;;  %v41_v23 = vshrl.u32 %v345_v14, %v38_v11  ;;  %v44_v24 = vshrl.u32 %v346_v16, %v38_v11  ;;  %v47_v25 = vshrl.u32 %v347_v18, %v38_v11 }
  0x1d   :  { %v50_v26 = vshrl.u32 %v348_v20, %v38_v11  ;;  %v53_v28 = vshrl.u32 %v349_v27, %v38_v11  ;;  %vm56_vm3 = vcmp.lt.s32.totalorder %v36_v9, 2  ;;  %vm57_vm4 = vcmp.lt.s32.totalorder %v36_v9, 3 }
  0x1e   :  { %v42_v30 = vor.u32 %v41_v23, %v40_v13  ;;  %v45_v31 = vor.u32 %v44_v24, %v43_v15  ;;  %v48_v32 = vor.u32 %v47_v25, %v46_v17 }
  0x1f   :  { %v51_v33 = vor.u32 %v50_v26, %v49_v19  ;;  %v54_v34 = vor.u32 %v53_v28, %v52_v21 }
  0x20   :  { %v59_v35 = vsel %vm55_vm1, %v39_v22, %v42_v30  ;;  %v60_v36 = vsel %vm58_vm2, %v48_v32, 2102212464  ;;  %v63_v37 = vsel %vm55_vm1, %v42_v30, %v45_v31  ;;  %v67_v38 = vsel %vm55_vm1, %v45_v31, %v48_v32 }
  0x21   :  { %v61_v39 = vsel %vm57_vm4, %v45_v31, %v60_v36  ;;  %v64_v40 = vsel %vm58_vm2, %v51_v33, 920167782  ;;  %v68_v41 = vsel %vm58_vm2, %v54_v34, 1326507024 }
  0x22   :  { %v65_v42 = vsel %vm57_vm4, %v48_v32, %v64_v40  ;;  %v69_v43 = vsel %vm57_vm4, %v51_v33, %v68_v41  ;;  %v62_v44 = vsel %vm56_vm3, %v59_v35, %v61_v39 }
  0x23   :  { %v66_v45 = vsel %vm56_vm3, %v63_v37, %v65_v42  ;;  %v70_v46 = vsel %vm56_vm3, %v67_v38, %v69_v43  ;;  %v78_v51 = vmul.u32 %v71_v29, %v62_v44 }
  0x24   :  { %v373_v47 = vmul.u32.u64.low %v71_v29, %v70_v46  ;;  %v374_v48 = vmul.u32.u64.high %v71_v29, %v70_v46, %v373_v47  ;;  %v376_v49 = vmul.u32.u64.low %v71_v29, %v66_v45  ;;  %v377_v50 = vmul.u32.u64.high %v71_v29, %v66_v45, %v376_v49 }
  0x26   :  { %vm80_vm5 = vc.u32 %v374_v48, %v376_v49  ;;  %v81_v52 = vadd.s32 1, %v377_v50  ;;  %v79_v63 = vadd.s32 %v376_v49, %v374_v48 }
  0x28   :  { %v82_v53 = vsel %vm80_vm5, %v81_v52, %v377_v50 }
  0x29   :  { %v83_v54 = vadd.s32 %v82_v53, %v78_v51 }
  0x2b   :  { %v84_v55 = vadd.s32 536870912, %v83_v54 }
  0x2d   :  { %v85_v56 = vshrl.u32 %v84_v55, 30 }
  0x2f   :  { %v86_v57 = vshll.u32 %v85_v56, 30  ;;  %v109_v15 = vsub.s32 4, %v85_v56 }
  0x31   :  { %v87_v58 = vsub.s32 %v83_v54, %v86_v57  ;;  %v110_v18 = vsel %vm25_vm7, %v109_v15, %v85_v56 }
  0x32   :  { %v112_v19 = vsel %vm24_vm8, 0, %v110_v18 }
  0x33   :  { %v89_v59 = vsub.s32 0, %v87_v58  ;;  %v116_v20 = vadd.s32 3, %v112_v19  ;;  %v220_v22 = vand.u32 3, %v112_v19 }
  0x35   :  { %v271_v60 = vmin.u32 %v89_v59, %v87_v58  ;;  %v117_v21 = vand.u32 3, %v116_v20  ;;  %vm225_vm10 = vcmp.eq.s32.totalorder %v220_v22, 2  ;;  %vm222_vm12 = vcmp.eq.s32.totalorder %v220_v22, 0 }
  0x36   :  { %vm221_vm14 = vcmp.lt.s32.totalorder %v220_v22, 2 }
  0x37   :  { %v91_v61 = vclz %v271_v60  ;;  %vm122_vm9 = vcmp.eq.s32.totalorder %v117_v21, 2  ;;  %vm119_vm11 = vcmp.eq.s32.totalorder %v117_v21, 0  ;;  %vm118_vm13 = vcmp.lt.s32.totalorder %v117_v21, 2 }
  0x39   :  { %v272_v62 = vadd.s32 4294967294, %v91_v61 }
  0x3b   :  { %vm273_vm6 = vcmp.lt.s32.totalorder %v272_v62, 0 }
  0x3c   :  { %v94_v1 = vsel %vm273_vm6, 0, %v272_v62 }
  0x3d   :  { %v95_v2 = vsub.s32 32, %v94_v1  ;;  %v96_v4 = vshll.u32 %v87_v58, %v94_v1  ;;  %v99_v5 = vsub.s32 4294967266, %v94_v1 }
  0x3f   :  { %v97_v6 = vshrl.u32 %v79_v63, %v95_v2  ;;  %v100_v7 = vadd.s32 127, %v99_v5 }
  0x41   :  { %v98_v8 = vor.u32 %v97_v6, %v96_v4  ;;  %v101_v9 = vshll.u32 %v100_v7, 23 }
  0x43   :  { %v102_v10 = vor.u32 4788187, %v101_v9  ;;  %v105_v11 = vcvt.s32.f32 %v98_v8 }
  0x45   :  { %v103_v12 = vand.u32 2147483647, %v102_v10 }
  0x47   :  { %v106_v13 = vmul.f32 %v105_v11, %v103_v12 }
  0x49   :  { %v107_v14 = vxor.u32 2147483648, %v106_v13 }
  0x4b   :  { %v108_v16 = vsel %vm25_vm7, %v107_v14, %v106_v13 }
  0x4c   :  { %v111_v17 = vsel %vm24_vm8, %v366_v0, %v108_v16 }
  0x4d   :  { %295 = vcosq.f32 %v111_v17 }
  0x4e   :  { %297 = vsinq.f32 %v111_v17 }
  0x5a   :  { %v296_v23 = vpop.eup %295 }
  0x5b   :  { %v298_v24 = vpop.eup %297  ;;  %v123_v25 = vxor.u32 2147483648, %v296_v23 }
  0x5c   :  { %v120_v3 = vxor.u32 2147483648, %v298_v24 }
  0x5d   :  { %v124_v26 = vsel %vm122_vm9, %v123_v25, %v298_v24  ;;  %v227_v27 = vsel %vm225_vm10, %v123_v25, %v298_v24 }
  0x5e   :  { %v121_v28 = vsel %vm119_vm11, %v296_v23, %v120_v3  ;;  %v224_v29 = vsel %vm222_vm12, %v296_v23, %v120_v3 }
  0x5f   :  { %v125_v30 = vsel %vm118_vm13, %v121_v28, %v124_v26  ;;  %v228_v31 = vsel %vm221_vm14, %v224_v29, %v227_v27 }
  0x60   :  { %v126_v32 = vsel %vm115_vm15, nan, %v125_v30  ;;  %v229_v33 = vsel %vm115_vm15, nan, %v228_v31 }
  0x61   :  { %230 = vst [vmem:[#allocation5 + $0x2] sm:$0x3] %v126_v32  ;;  %v232_v34 = vmul.f32 2.0, %v126_v32  ;;  %v234_v35 = vmul.f32 2.0, %v229_v33  ;;  %231 = vst [vmem:[#allocation5 + $0x4] sm:$0x3] %v229_v33 }
  0x63   :  { %v235_v36 = vmul.f32 %v234_v35, %v229_v33  ;;  %v233_v37 = vmul.f32 %v232_v34, %v229_v33 }
  0x65   :  { %v278_v38 = vadd.f32 -1.0, %v235_v36  ;;  %237 = vst [vmem:[#allocation5 + $0x6] sm:$0x3] %v233_v37  ;;  %v239_v39 = vmul.f32 2.0, %v233_v37 }
  0x67   :  { %238 = vst [vmem:[#allocation5 + $0x8] sm:$0x3] %v278_v38  ;;  %v240_v40 = vmul.f32 %v278_v38, %v239_v39  ;;  %v241_v0 = vmul.f32 2.0, %v278_v38 }
  0x69   :  { %244 = vst [vmem:[#allocation5 + $0xa] sm:$0x3] %v240_v40  ;;  %v242_v41 = vmul.f32 %v278_v38, %v241_v0  ;;  %v246_v42 = vmul.f32 2.0, %v240_v40 }
  0x6b   :  { %v279_v43 = vadd.f32 -1.0, %v242_v41 }
  0x6d   :  { %245 = vst [vmem:[#allocation5 + $0xc] sm:$0x3] %v279_v43  ;;  %v247_v44 = vmul.f32 %v279_v43, %v246_v42  ;;  %v248_v45 = vmul.f32 2.0, %v279_v43 }
  0x6f   :  { %251 = vst [vmem:[#allocation5 + $0xe] sm:$0x3] %v247_v44  ;;  %v249_v46 = vmul.f32 %v279_v43, %v248_v45 }
  0x71   :  { %v280_v47 = vadd.f32 -1.0, %v249_v46 }
  0x73   :  { %252 = vst [vmem:[#allocation5 + $0x10] sm:$0x3] %v280_v47 }
  0x74   :  { %330 = shalt.err (!%p327_p9)
}
  0x75   :  { %s351_s13 = smov 128   ;;  %s352_s14 = smov 8  }
  0x76   :  { %264 = dma.vmem_to_hbm [thread:$0]  %s259_s11, 384, %s392_s1, [#allocation4], %s351_s13, %s351_s13, %s352_s14  }
  0x77   :  { %341 = dma.done.wait [#allocation4], 384  }
  0x78   :  { %342 = vsyncadd [#allocation4], 4294966912 }
  0x79   :  { %268 = vsyncpa [#allocation3], 1 }
  0x7a   :  { %269 = vsyncpa [#allocation4], 1 }

</bundles_post_ra>
